<compile_context>
chip_gen: v7x
topology: tpu7x:2x2x1
jax: 0.10.0
libtpu: 0.0.40
codegen_flags: <defaults>
</compile_context>

<pallas_src>
from functools import partial

import jax
import jax.numpy as jnp
import numpy as np
from jax import lax
from jax.experimental import pallas as pl
from jax.experimental.pallas import tpu as pltpu


# ---------------------------------------------------------------------------
# Fused kernel.  Grid: (N // Nb,), "arbitrary".
#   x_ref   : (Nb, Cin, Lr)        row-padded, lane-dense flat image
#   w_ref   : (groups, cout_g, K*K*cin_g)
#   idx_ref : (1, Lr) int32        column index (q mod W) of each lane
#   g_ref   : (Cout, 1) f32        BN gamma
#   b_ref   : (Cout, 1) f32        BN beta
#   o_ref   : (N, Cout, P)         VMEM-resident across the whole grid
#   ssum/ssq: (Cout, 1) f32        batch-stat accumulators (scratch)
# ---------------------------------------------------------------------------
def _conv_bn_silu_kernel(x_ref, w_ref, idx_ref, g_ref, b_ref, o_ref,
                         ssum, ssq, *, K, stride, groups, cin_g, cout_g,
                         Nb, N, Hr, W, Ho, Wo, pad, eps):
    i = pl.program_id(0)
    Lr = Hr * W
    P = Ho * Wo
    fast_extract = (stride == 1 and Wo == W)   # valid outputs = lane prefix

    @pl.when(i == 0)
    def _init():
        ssum[...] = jnp.zeros_like(ssum)
        ssq[...] = jnp.zeros_like(ssq)

    # Per-kw lane masks emulating the horizontal zero padding (column index of
    # the needed input pixel is wo + kw - pad; outside [0, W) contributes 0).
    col_idx = idx_ref[...]                                   # (1, Lr) int32
    kw_mask = {}
    for kw in range(K):
        if kw != pad:
            kw_mask[kw] = ((col_idx >= (pad - kw)) &
                           (col_idx < (W + pad - kw)))       # (1, Lr) bool

    for b in range(Nb):                       # static unroll, Nb is small
        n_idx = i * Nb + b                    # global batch index (dynamic)
        for g in range(groups):
            c0, o0 = g * cin_g, g * cout_g
            xg = x_ref[b, c0:c0 + cin_g, :]                  # (cin_g, Lr)

            # im2col via lane rotations (XLU), no strided reshapes.
            taps = []
            for kh in range(K):
                for kw in range(K):
                    d = kh * W + (kw - pad)
                    shift = (-d) % Lr
                    tap = xg if shift == 0 else pltpu.roll(xg, shift=shift,
                                                           axis=1)
                    if kw != pad:
                        tap = jnp.where(kw_mask[kw], tap, 0)
                    taps.append(tap)
            col = jnp.concatenate(taps, axis=0)              # (K*K*cin_g, Lr)

            # One folded MXU matmul per (image, group); f32 accumulation.
            yp = jnp.dot(w_ref[g], col,
                         preferred_element_type=jnp.float32)  # (cout_g, Lr)

            if fast_extract:
                yv = yp[:, :P]                               # free prefix slice
            else:
                # TODO(synk): stride>1 path (strided extraction) is untested.
                yv = yp.reshape(cout_g, Hr, W)[
                    :, 0:(Ho - 1) * stride + 1:stride,
                    0:(Wo - 1) * stride + 1:stride].reshape(cout_g, P)

            # Raw conv (pre-BN) into the VMEM-resident output block.
            o_ref[pl.ds(n_idx, 1), o0:o0 + cout_g, :] = (
                yv[None].astype(o_ref.dtype))

            # Per-channel batch statistics, accumulated in f32.
            ssum[o0:o0 + cout_g, :] += jnp.sum(yv, axis=1, keepdims=True)
            ssq[o0:o0 + cout_g, :] += jnp.sum(yv * yv, axis=1, keepdims=True)

    @pl.when(i == pl.num_programs(0) - 1)
    def _finalize():
        inv_cnt = 1.0 / float(N * P)
        mean = ssum[...] * inv_cnt                           # (Cout, 1)
        var = jnp.maximum(ssq[...] * inv_cnt - mean * mean, 0.0)
        scale = g_ref[...] * lax.rsqrt(var + eps)            # (Cout, 1)
        shift = b_ref[...] - mean * scale
        z = o_ref[...].astype(jnp.float32) * scale[None] + shift[None]
        o_ref[...] = (z * jax.nn.sigmoid(z)).astype(o_ref.dtype)


# ---------------------------------------------------------------------------
# Wrapper: PyTorch layouts in / out.  x (N,Cin,H,W), weight (Cout,Cin//g,K,K).
# Glue is only zero row-padding, free reshapes and a weight transpose.
# ---------------------------------------------------------------------------
def conv_bn_act(x_nchw, weight_oikk, gamma, beta, *, stride=1, groups=1,
                eps=1e-5, batch_block=None):
    N, Cin, H, W = x_nchw.shape
    Cout, cin_g, K, _ = weight_oikk.shape
    assert Cin == cin_g * groups and Cout % groups == 0
    cout_g = Cout // groups
    pad = (K - 1) // 2
    Ho = (H + 2 * pad - K) // stride + 1
    Wo = (W + 2 * pad - K) // stride + 1
    Hr = H + 2 * pad                     # padded rows only; columns via masks
    Lr = Hr * W
    P = Ho * Wo

    # Lane-dense input: pad rows, flatten (H+2p, W) -> one lane axis (free
    # reshape for contiguous NCHW).
    x_flat = jnp.pad(x_nchw, ((0, 0), (0, 0), (pad, pad), (0, 0))
                     ).reshape(N, Cin, Lr)

    # (Cout, cin_g, K, K) -> (groups, cout_g, K*K*cin_g); last-dim ordering
    # (kh, kw, ci) matches the in-kernel tap concatenation.
    w2 = jnp.transpose(weight_oikk, (0, 2, 3, 1)).reshape(
        groups, cout_g, K * K * cin_g).astype(x_nchw.dtype)
    g2 = gamma.reshape(Cout, 1).astype(jnp.float32)
    b2 = beta.reshape(Cout, 1).astype(jnp.float32)
    # Column index of every lane of the flat padded image (for the kw masks).
    col_idx = jnp.asarray((np.arange(Lr) % W).reshape(1, Lr), dtype=jnp.int32)

    # Batch-chunk per grid step: whole batch when small (single fused step),
    # otherwise the largest divisor of N whose input block fits the budget.
    if batch_block is None:
        per_image = Cin * Lr * x_nchw.dtype.itemsize
        budget = 8 * 1024 * 1024
        batch_block = max((nb for nb in range(1, N + 1)
                           if N % nb == 0 and nb * per_image <= budget),
                          default=1)
    assert N % batch_block == 0
    n_steps = N // batch_block

    kernel = partial(_conv_bn_silu_kernel, K=K, stride=stride, groups=groups,
                     cin_g=cin_g, cout_g=cout_g, Nb=batch_block, N=N,
                     Hr=Hr, W=W, Ho=Ho, Wo=Wo, pad=pad, eps=eps)

    y = pl.pallas_call(
        kernel,
        grid=(n_steps,),
        out_shape=jax.ShapeDtypeStruct((N, Cout, P), x_nchw.dtype),
        in_specs=[
            pl.BlockSpec((batch_block, Cin, Lr), lambda i: (i, 0, 0)),
            pl.BlockSpec((groups, cout_g, K * K * cin_g), lambda i: (0, 0, 0)),
            pl.BlockSpec((1, Lr), lambda i: (0, 0)),
            pl.BlockSpec((Cout, 1), lambda i: (0, 0)),
            pl.BlockSpec((Cout, 1), lambda i: (0, 0)),
        ],
        # Constant index map -> full output stays VMEM-resident across the grid.
        out_specs=pl.BlockSpec((N, Cout, P), lambda i: (0, 0, 0)),
        scratch_shapes=[pltpu.VMEM((Cout, 1), jnp.float32),
                        pltpu.VMEM((Cout, 1), jnp.float32)],
        compiler_params=pltpu.CompilerParams(
            dimension_semantics=("arbitrary",),
            vmem_limit_bytes=48 * 1024 * 1024),
    )(x_flat, w2, col_idx, g2, b2)

    # Free reshape: (N, Cout, Ho*Wo) is already NCHW-contiguous.
    return y.reshape(N, Cout, Ho, Wo)


# ---------------------------------------------------------------------------
# Pure-JAX reference (validation only).
# ---------------------------------------------------------------------------
def reference(x_nchw, weight, gamma, beta, *, stride=1, groups=1, eps=1e-5):
    K = weight.shape[-1]
    pad = (K - 1) // 2
    y = lax.conv_general_dilated(
        x_nchw, weight, window_strides=(stride, stride),
        padding=[(pad, pad), (pad, pad)],
        dimension_numbers=("NCHW", "OIHW", "NCHW"),
        feature_group_count=groups)
    mean = y.mean(axis=(0, 2, 3), keepdims=True)
    var = ((y - mean) ** 2).mean(axis=(0, 2, 3), keepdims=True)
    z = (y - mean) * lax.rsqrt(var + eps)
    z = z * gamma.reshape(1, -1, 1, 1) + beta.reshape(1, -1, 1, 1)
    return z * jax.nn.sigmoid(z)


if __name__ == "__main__":
    # Shapes consistent with ConvBNAct(in_planes=4, out_planes=8) defaults.
    N, Cin, H, W = 2, 4, 16, 16
    Cout, K, stride, groups = 8, 3, 1, 1

    key = jax.random.PRNGKey(0)
    kx, kw = jax.random.split(key)
    x = jax.random.normal(kx, (N, Cin, H, W), dtype=jnp.float32)
    fan_in = (Cin // groups) * K * K
    weight = jax.random.normal(kw, (Cout, Cin // groups, K, K),
                               dtype=jnp.float32) / np.sqrt(fan_in)
    gamma = 1.0 + 0.1 * jnp.arange(Cout, dtype=jnp.float32)
    beta = 0.05 * jnp.arange(Cout, dtype=jnp.float32) - 0.1

    ref = jax.block_until_ready(
        reference(x, weight, gamma, beta, stride=stride, groups=groups))

    # Default config: whole batch fused into a single grid step.
    out = jax.block_until_ready(
        conv_bn_act(x, weight, gamma, beta, stride=stride, groups=groups))
    np.testing.assert_allclose(np.asarray(out), np.asarray(ref),
                               rtol=1e-3, atol=1e-3)

    # Also exercise the multi-step resident-output path (1 image per step).
    out2 = jax.block_until_ready(
        conv_bn_act(x, weight, gamma, beta, stride=stride, groups=groups,
                    batch_block=1))
    np.testing.assert_allclose(np.asarray(out2), np.asarray(ref),
                               rtol=1e-3, atol=1e-3)

    print("KERNEL_OK")
</pallas_src>

<mosaic_0001>
module attributes {stable_mosaic.version = 11 : i64} {
  func.func @_conv_bn_silu_kernel(%arg0: i32, %arg1: memref<2x4x288xf32, #tpu.memory_space<vmem>>, %arg2: memref<1x8x36xf32, #tpu.memory_space<vmem>>, %arg3: memref<1x288xi32, #tpu.memory_space<vmem>>, %arg4: memref<8x1xf32, #tpu.memory_space<vmem>>, %arg5: memref<8x1xf32, #tpu.memory_space<vmem>>, %arg6: memref<2x8x256xf32, #tpu.memory_space<vmem>>, %arg7: memref<8x1xf32, #tpu.memory_space<vmem>>, %arg8: memref<8x1xf32, #tpu.memory_space<vmem>>) attributes {dimension_semantics = [#tpu.dimension_semantics<arbitrary>], iteration_bounds = array<i64: 1>, scalar_prefetch = 0 : i64, scratch_operands = 2 : i64, tpu.core_type = #tpu.core_type<tc>, window_params = [{transform_indices = @transform_0, window_bounds = array<i64: 2, 4, 288>}, {pipeline_mode = #tpu.pipeline_mode<synchronous>, transform_indices = @transform_1, window_bounds = array<i64: 1, 8, 36>}, {pipeline_mode = #tpu.pipeline_mode<synchronous>, transform_indices = @transform_2, window_bounds = array<i64: 1, 288>}, {pipeline_mode = #tpu.pipeline_mode<synchronous>, transform_indices = @transform_3, window_bounds = array<i64: 8, 1>}, {pipeline_mode = #tpu.pipeline_mode<synchronous>, transform_indices = @transform_4, window_bounds = array<i64: 8, 1>}, {pipeline_mode = #tpu.pipeline_mode<synchronous>, transform_indices = @transform_5, window_bounds = array<i64: 2, 8, 256>}]} {
    %c0_i32 = arith.constant 0 : i32
    %0 = arith.cmpi eq, %arg0, %c0_i32 : i32
    %1 = arith.extui %0 : i1 to i32
    %c0_i32_0 = arith.constant 0 : i32
    %2 = arith.cmpi ne, %1, %c0_i32_0 : i32
    scf.if %2 {
      %cst_64 = arith.constant 0.000000e+00 : f32
      %139 = vector.broadcast %cst_64 : f32 to vector<8x1xf32>
      %c0_65 = arith.constant 0 : index
      %c0_66 = arith.constant 0 : index
      %140 = vector.load %arg7[%c0_65, %c0_66] : memref<8x1xf32, #tpu.memory_space<vmem>>, vector<8x1xf32>
      tpu.vector_store %arg7[%c0_65, %c0_66], %139 {strides = array<i32>} : memref<8x1xf32, #tpu.memory_space<vmem>>, vector<8x1xf32>,
      %cst_67 = arith.constant 0.000000e+00 : f32
      %141 = vector.broadcast %cst_67 : f32 to vector<8x1xf32>
      %c0_68 = arith.constant 0 : index
      %c0_69 = arith.constant 0 : index
      %142 = vector.load %arg8[%c0_68, %c0_69] : memref<8x1xf32, #tpu.memory_space<vmem>>, vector<8x1xf32>
      tpu.vector_store %arg8[%c0_68, %c0_69], %141 {strides = array<i32>} : memref<8x1xf32, #tpu.memory_space<vmem>>, vector<8x1xf32>,
    } else {
    }
    %c0 = arith.constant 0 : index
    %c0_1 = arith.constant 0 : index
    %3 = vector.load %arg3[%c0, %c0_1] : memref<1x288xi32, #tpu.memory_space<vmem>>, vector<1x288xi32>
    %c1_i32 = arith.constant 1 : i32
    %4 = vector.broadcast %c1_i32 : i32 to vector<1x288xi32>
    %5 = arith.cmpi sge, %3, %4 : vector<1x288xi32>
    %c17_i32 = arith.constant 17 : i32
    %6 = vector.broadcast %c17_i32 : i32 to vector<1x288xi32>
    %7 = arith.cmpi slt, %3, %6 : vector<1x288xi32>
    %8 = arith.andi %5, %7 : vector<1x288xi1>
    %c-1_i32 = arith.constant -1 : i32
    %9 = vector.broadcast %c-1_i32 : i32 to vector<1x288xi32>
    %10 = arith.cmpi sge, %3, %9 : vector<1x288xi32>
    %c15_i32 = arith.constant 15 : i32
    %11 = vector.broadcast %c15_i32 : i32 to vector<1x288xi32>
    %12 = arith.cmpi slt, %3, %11 : vector<1x288xi32>
    %13 = arith.andi %10, %12 : vector<1x288xi1>
    %c2_i32 = arith.constant 2 : i32
    %14 = arith.muli %arg0, %c2_i32 : i32
    %c0_i32_2 = arith.constant 0 : i32
    %15 = arith.addi %14, %c0_i32_2 : i32
    %c0_3 = arith.constant 0 : index
    %c0_4 = arith.constant 0 : index
    %c0_5 = arith.constant 0 : index
    %16 = vector.load %arg1[%c0_3, %c0_4, %c0_5] : memref<2x4x288xf32, #tpu.memory_space<vmem>>, vector<1x4x288xf32>
    %17 = vector.shape_cast %16 : vector<1x4x288xf32> to vector<4x288xf32>
    %c1_i32_6 = arith.constant 1 : i32
    %18 = tpu.dynamic_rotate %17 by %c1_i32_6 dim 1 : vector<4x288xf32>, i32 -> vector<4x288xf32>
    %c0_i32_7 = arith.constant 0 : i32
    %19 = arith.sitofp %c0_i32_7 : i32 to f32
    %20 = vector.shape_cast %8 : vector<1x288xi1> to vector<1x288xi1>
    %21 = vector.broadcast %20 : vector<1x288xi1> to vector<4x288xi1>
    %22 = vector.broadcast %19 : f32 to vector<4x288xf32>
    %23 = arith.select %21, %18, %22 : vector<4x288xi1>, vector<4x288xf32>
    %c287_i32 = arith.constant 287 : i32
    %24 = tpu.dynamic_rotate %17 by %c287_i32 dim 1 : vector<4x288xf32>, i32 -> vector<4x288xf32>
    %c0_i32_8 = arith.constant 0 : i32
    %25 = arith.sitofp %c0_i32_8 : i32 to f32
    %26 = vector.shape_cast %13 : vector<1x288xi1> to vector<1x288xi1>
    %27 = vector.broadcast %26 : vector<1x288xi1> to vector<4x288xi1>
    %28 = vector.broadcast %25 : f32 to vector<4x288xf32>
    %29 = arith.select %27, %24, %28 : vector<4x288xi1>, vector<4x288xf32>
    %c273_i32 = arith.constant 273 : i32
    %30 = tpu.dynamic_rotate %17 by %c273_i32 dim 1 : vector<4x288xf32>, i32 -> vector<4x288xf32>
    %c0_i32_9 = arith.constant 0 : i32
    %31 = arith.sitofp %c0_i32_9 : i32 to f32
    %32 = vector.shape_cast %8 : vector<1x288xi1> to vector<1x288xi1>
    %33 = vector.broadcast %32 : vector<1x288xi1> to vector<4x288xi1>
    %34 = vector.broadcast %31 : f32 to vector<4x288xf32>
    %35 = arith.select %33, %30, %34 : vector<4x288xi1>, vector<4x288xf32>
    %c272_i32 = arith.constant 272 : i32
    %36 = tpu.dynamic_rotate %17 by %c272_i32 dim 1 : vector<4x288xf32>, i32 -> vector<4x288xf32>
    %c271_i32 = arith.constant 271 : i32
    %37 = tpu.dynamic_rotate %17 by %c271_i32 dim 1 : vector<4x288xf32>, i32 -> vector<4x288xf32>
    %c0_i32_10 = arith.constant 0 : i32
    %38 = arith.sitofp %c0_i32_10 : i32 to f32
    %39 = vector.shape_cast %13 : vector<1x288xi1> to vector<1x288xi1>
    %40 = vector.broadcast %39 : vector<1x288xi1> to vector<4x288xi1>
    %41 = vector.broadcast %38 : f32 to vector<4x288xf32>
    %42 = arith.select %40, %37, %41 : vector<4x288xi1>, vector<4x288xf32>
    %c257_i32 = arith.constant 257 : i32
    %43 = tpu.dynamic_rotate %17 by %c257_i32 dim 1 : vector<4x288xf32>, i32 -> vector<4x288xf32>
    %c0_i32_11 = arith.constant 0 : i32
    %44 = arith.sitofp %c0_i32_11 : i32 to f32
    %45 = vector.shape_cast %8 : vector<1x288xi1> to vector<1x288xi1>
    %46 = vector.broadcast %45 : vector<1x288xi1> to vector<4x288xi1>
    %47 = vector.broadcast %44 : f32 to vector<4x288xf32>
    %48 = arith.select %46, %43, %47 : vector<4x288xi1>, vector<4x288xf32>
    %c256_i32 = arith.constant 256 : i32
    %49 = tpu.dynamic_rotate %17 by %c256_i32 dim 1 : vector<4x288xf32>, i32 -> vector<4x288xf32>
    %c255_i32 = arith.constant 255 : i32
    %50 = tpu.dynamic_rotate %17 by %c255_i32 dim 1 : vector<4x288xf32>, i32 -> vector<4x288xf32>
    %c0_i32_12 = arith.constant 0 : i32
    %51 = arith.sitofp %c0_i32_12 : i32 to f32
    %52 = vector.shape_cast %13 : vector<1x288xi1> to vector<1x288xi1>
    %53 = vector.broadcast %52 : vector<1x288xi1> to vector<4x288xi1>
    %54 = vector.broadcast %51 : f32 to vector<4x288xf32>
    %55 = arith.select %53, %50, %54 : vector<4x288xi1>, vector<4x288xf32>
    %56 = tpu.concatenate %23, %17, %29, %35, %36, %42, %48, %49, %55 in 0 : vector<4x288xf32>, vector<4x288xf32>, vector<4x288xf32>, vector<4x288xf32>, vector<4x288xf32>, vector<4x288xf32>, vector<4x288xf32>, vector<4x288xf32>, vector<4x288xf32> -> vector<36x288xf32>
    %c0_13 = arith.constant 0 : index
    %c0_14 = arith.constant 0 : index
    %c0_15 = arith.constant 0 : index
    %57 = vector.load %arg2[%c0_13, %c0_14, %c0_15] : memref<1x8x36xf32, #tpu.memory_space<vmem>>, vector<1x8x36xf32>
    %58 = vector.shape_cast %57 : vector<1x8x36xf32> to vector<8x36xf32>
    %cst = arith.constant dense<0.000000e+00> : vector<8x288xf32>
    %59 = tpu.matmul %58, %56, %cst {dimension_numbers = #tpu.dot_dimension_numbers<[1], [0], [0], [1], [0, 0, 1, 1], [], []>} : vector<8x36xf32>, vector<36x288xf32>, vector<8x288xf32> -> vector<8x288xf32>
    %60 = vector.extract_strided_slice %59 {offsets = [0, 0], sizes = [8, 256], strides = [1, 1]} : vector<8x288xf32> to vector<8x256xf32>
    %61 = vector.shape_cast %60 : vector<8x256xf32> to vector<1x8x256xf32>
    %62 = arith.index_cast %15 : i32 to index
    %c0_16 = arith.constant 0 : index
    %c0_17 = arith.constant 0 : index
    %63 = vector.load %arg6[%62, %c0_16, %c0_17] : memref<2x8x256xf32, #tpu.memory_space<vmem>>, vector<1x8x256xf32>
    tpu.vector_store %arg6[%62, %c0_16, %c0_17], %61 {strides = array<i32>} : memref<2x8x256xf32, #tpu.memory_space<vmem>>, vector<1x8x256xf32>,
    %c0_18 = arith.constant 0 : index
    %c0_19 = arith.constant 0 : index
    %64 = vector.load %arg7[%c0_18, %c0_19] : memref<8x1xf32, #tpu.memory_space<vmem>>, vector<8x1xf32>
    %cst_20 = arith.constant dense<0.000000e+00> : vector<8xf32>
    %65 = vector.multi_reduction <add>, %60, %cst_20 [1] : vector<8x256xf32> to vector<8xf32>
    %66 = vector.shape_cast %65 : vector<8xf32> to vector<8x1xf32>
    %67 = arith.addf %64, %66 : vector<8x1xf32>
    %c0_21 = arith.constant 0 : index
    %c0_22 = arith.constant 0 : index
    %68 = vector.load %arg7[%c0_21, %c0_22] : memref<8x1xf32, #tpu.memory_space<vmem>>, vector<8x1xf32>
    tpu.vector_store %arg7[%c0_21, %c0_22], %67 {strides = array<i32>} : memref<8x1xf32, #tpu.memory_space<vmem>>, vector<8x1xf32>,
    %c0_23 = arith.constant 0 : index
    %c0_24 = arith.constant 0 : index
    %69 = vector.load %arg8[%c0_23, %c0_24] : memref<8x1xf32, #tpu.memory_space<vmem>>, vector<8x1xf32>
    %70 = arith.mulf %60, %60 : vector<8x256xf32>
    %cst_25 = arith.constant dense<0.000000e+00> : vector<8xf32>
    %71 = vector.multi_reduction <add>, %70, %cst_25 [1] : vector<8x256xf32> to vector<8xf32>
    %72 = vector.shape_cast %71 : vector<8xf32> to vector<8x1xf32>
    %73 = arith.addf %69, %72 : vector<8x1xf32>
    %c0_26 = arith.constant 0 : index
    %c0_27 = arith.constant 0 : index
    %74 = vector.load %arg8[%c0_26, %c0_27] : memref<8x1xf32, #tpu.memory_space<vmem>>, vector<8x1xf32>
    tpu.vector_store %arg8[%c0_26, %c0_27], %73 {strides = array<i32>} : memref<8x1xf32, #tpu.memory_space<vmem>>, vector<8x1xf32>,
    %c2_i32_28 = arith.constant 2 : i32
    %75 = arith.muli %arg0, %c2_i32_28 : i32
    %c1_i32_29 = arith.constant 1 : i32
    %76 = arith.addi %75, %c1_i32_29 : i32
    %c1 = arith.constant 1 : index
    %c0_30 = arith.constant 0 : index
    %c0_31 = arith.constant 0 : index
    %77 = vector.load %arg1[%c1, %c0_30, %c0_31] : memref<2x4x288xf32, #tpu.memory_space<vmem>>, vector<1x4x288xf32>
    %78 = vector.shape_cast %77 : vector<1x4x288xf32> to vector<4x288xf32>
    %c1_i32_32 = arith.constant 1 : i32
    %79 = tpu.dynamic_rotate %78 by %c1_i32_32 dim 1 : vector<4x288xf32>, i32 -> vector<4x288xf32>
    %c0_i32_33 = arith.constant 0 : i32
    %80 = arith.sitofp %c0_i32_33 : i32 to f32
    %81 = vector.shape_cast %8 : vector<1x288xi1> to vector<1x288xi1>
    %82 = vector.broadcast %81 : vector<1x288xi1> to vector<4x288xi1>
    %83 = vector.broadcast %80 : f32 to vector<4x288xf32>
    %84 = arith.select %82, %79, %83 : vector<4x288xi1>, vector<4x288xf32>
    %c287_i32_34 = arith.constant 287 : i32
    %85 = tpu.dynamic_rotate %78 by %c287_i32_34 dim 1 : vector<4x288xf32>, i32 -> vector<4x288xf32>
    %c0_i32_35 = arith.constant 0 : i32
    %86 = arith.sitofp %c0_i32_35 : i32 to f32
    %87 = vector.shape_cast %13 : vector<1x288xi1> to vector<1x288xi1>
    %88 = vector.broadcast %87 : vector<1x288xi1> to vector<4x288xi1>
    %89 = vector.broadcast %86 : f32 to vector<4x288xf32>
    %90 = arith.select %88, %85, %89 : vector<4x288xi1>, vector<4x288xf32>
    %c273_i32_36 = arith.constant 273 : i32
    %91 = tpu.dynamic_rotate %78 by %c273_i32_36 dim 1 : vector<4x288xf32>, i32 -> vector<4x288xf32>
    %c0_i32_37 = arith.constant 0 : i32
    %92 = arith.sitofp %c0_i32_37 : i32 to f32
    %93 = vector.shape_cast %8 : vector<1x288xi1> to vector<1x288xi1>
    %94 = vector.broadcast %93 : vector<1x288xi1> to vector<4x288xi1>
    %95 = vector.broadcast %92 : f32 to vector<4x288xf32>
    %96 = arith.select %94, %91, %95 : vector<4x288xi1>, vector<4x288xf32>
    %c272_i32_38 = arith.constant 272 : i32
    %97 = tpu.dynamic_rotate %78 by %c272_i32_38 dim 1 : vector<4x288xf32>, i32 -> vector<4x288xf32>
    %c271_i32_39 = arith.constant 271 : i32
    %98 = tpu.dynamic_rotate %78 by %c271_i32_39 dim 1 : vector<4x288xf32>, i32 -> vector<4x288xf32>
    %c0_i32_40 = arith.constant 0 : i32
    %99 = arith.sitofp %c0_i32_40 : i32 to f32
    %100 = vector.shape_cast %13 : vector<1x288xi1> to vector<1x288xi1>
    %101 = vector.broadcast %100 : vector<1x288xi1> to vector<4x288xi1>
    %102 = vector.broadcast %99 : f32 to vector<4x288xf32>
    %103 = arith.select %101, %98, %102 : vector<4x288xi1>, vector<4x288xf32>
    %c257_i32_41 = arith.constant 257 : i32
    %104 = tpu.dynamic_rotate %78 by %c257_i32_41 dim 1 : vector<4x288xf32>, i32 -> vector<4x288xf32>
    %c0_i32_42 = arith.constant 0 : i32
    %105 = arith.sitofp %c0_i32_42 : i32 to f32
    %106 = vector.shape_cast %8 : vector<1x288xi1> to vector<1x288xi1>
    %107 = vector.broadcast %106 : vector<1x288xi1> to vector<4x288xi1>
    %108 = vector.broadcast %105 : f32 to vector<4x288xf32>
    %109 = arith.select %107, %104, %108 : vector<4x288xi1>, vector<4x288xf32>
    %c256_i32_43 = arith.constant 256 : i32
    %110 = tpu.dynamic_rotate %78 by %c256_i32_43 dim 1 : vector<4x288xf32>, i32 -> vector<4x288xf32>
    %c255_i32_44 = arith.constant 255 : i32
    %111 = tpu.dynamic_rotate %78 by %c255_i32_44 dim 1 : vector<4x288xf32>, i32 -> vector<4x288xf32>
    %c0_i32_45 = arith.constant 0 : i32
    %112 = arith.sitofp %c0_i32_45 : i32 to f32
    %113 = vector.shape_cast %13 : vector<1x288xi1> to vector<1x288xi1>
    %114 = vector.broadcast %113 : vector<1x288xi1> to vector<4x288xi1>
    %115 = vector.broadcast %112 : f32 to vector<4x288xf32>
    %116 = arith.select %114, %111, %115 : vector<4x288xi1>, vector<4x288xf32>
    %117 = tpu.concatenate %84, %78, %90, %96, %97, %103, %109, %110, %116 in 0 : vector<4x288xf32>, vector<4x288xf32>, vector<4x288xf32>, vector<4x288xf32>, vector<4x288xf32>, vector<4x288xf32>, vector<4x288xf32>, vector<4x288xf32>, vector<4x288xf32> -> vector<36x288xf32>
    %c0_46 = arith.constant 0 : index
    %c0_47 = arith.constant 0 : index
    %c0_48 = arith.constant 0 : index
    %118 = vector.load %arg2[%c0_46, %c0_47, %c0_48] : memref<1x8x36xf32, #tpu.memory_space<vmem>>, vector<1x8x36xf32>
    %119 = vector.shape_cast %118 : vector<1x8x36xf32> to vector<8x36xf32>
    %cst_49 = arith.constant dense<0.000000e+00> : vector<8x288xf32>
    %120 = tpu.matmul %119, %117, %cst_49 {dimension_numbers = #tpu.dot_dimension_numbers<[1], [0], [0], [1], [0, 0, 1, 1], [], []>} : vector<8x36xf32>, vector<36x288xf32>, vector<8x288xf32> -> vector<8x288xf32>
    %121 = vector.extract_strided_slice %120 {offsets = [0, 0], sizes = [8, 256], strides = [1, 1]} : vector<8x288xf32> to vector<8x256xf32>
    %122 = vector.shape_cast %121 : vector<8x256xf32> to vector<1x8x256xf32>
    %123 = arith.index_cast %76 : i32 to index
    %c0_50 = arith.constant 0 : index
    %c0_51 = arith.constant 0 : index
    %124 = vector.load %arg6[%123, %c0_50, %c0_51] : memref<2x8x256xf32, #tpu.memory_space<vmem>>, vector<1x8x256xf32>
    tpu.vector_store %arg6[%123, %c0_50, %c0_51], %122 {strides = array<i32>} : memref<2x8x256xf32, #tpu.memory_space<vmem>>, vector<1x8x256xf32>,
    %c0_52 = arith.constant 0 : index
    %c0_53 = arith.constant 0 : index
    %125 = vector.load %arg7[%c0_52, %c0_53] : memref<8x1xf32, #tpu.memory_space<vmem>>, vector<8x1xf32>
    %cst_54 = arith.constant dense<0.000000e+00> : vector<8xf32>
    %126 = vector.multi_reduction <add>, %121, %cst_54 [1] : vector<8x256xf32> to vector<8xf32>
    %127 = vector.shape_cast %126 : vector<8xf32> to vector<8x1xf32>
    %128 = arith.addf %125, %127 : vector<8x1xf32>
    %c0_55 = arith.constant 0 : index
    %c0_56 = arith.constant 0 : index
    %129 = vector.load %arg7[%c0_55, %c0_56] : memref<8x1xf32, #tpu.memory_space<vmem>>, vector<8x1xf32>
    tpu.vector_store %arg7[%c0_55, %c0_56], %128 {strides = array<i32>} : memref<8x1xf32, #tpu.memory_space<vmem>>, vector<8x1xf32>,
    %c0_57 = arith.constant 0 : index
    %c0_58 = arith.constant 0 : index
    %130 = vector.load %arg8[%c0_57, %c0_58] : memref<8x1xf32, #tpu.memory_space<vmem>>, vector<8x1xf32>
    %131 = arith.mulf %121, %121 : vector<8x256xf32>
    %cst_59 = arith.constant dense<0.000000e+00> : vector<8xf32>
    %132 = vector.multi_reduction <add>, %131, %cst_59 [1] : vector<8x256xf32> to vector<8xf32>
    %133 = vector.shape_cast %132 : vector<8xf32> to vector<8x1xf32>
    %134 = arith.addf %130, %133 : vector<8x1xf32>
    %c0_60 = arith.constant 0 : index
    %c0_61 = arith.constant 0 : index
    %135 = vector.load %arg8[%c0_60, %c0_61] : memref<8x1xf32, #tpu.memory_space<vmem>>, vector<8x1xf32>
    tpu.vector_store %arg8[%c0_60, %c0_61], %134 {strides = array<i32>} : memref<8x1xf32, #tpu.memory_space<vmem>>, vector<8x1xf32>,
    %c0_i32_62 = arith.constant 0 : i32
    %136 = arith.cmpi eq, %arg0, %c0_i32_62 : i32
    %137 = arith.extui %136 : i1 to i32
    %c0_i32_63 = arith.constant 0 : i32
    %138 = arith.cmpi ne, %137, %c0_i32_63 : i32
    scf.if %138 {
      %c0_64 = arith.constant 0 : index
      %c0_65 = arith.constant 0 : index
      %139 = vector.load %arg7[%c0_64, %c0_65] : memref<8x1xf32, #tpu.memory_space<vmem>>, vector<8x1xf32>
      %cst_66 = arith.constant 0.001953125 : f32
      %140 = vector.broadcast %cst_66 : f32 to vector<8x1xf32>
      %141 = arith.mulf %139, %140 : vector<8x1xf32>
      %c0_67 = arith.constant 0 : index
      %c0_68 = arith.constant 0 : index
      %142 = vector.load %arg8[%c0_67, %c0_68] : memref<8x1xf32, #tpu.memory_space<vmem>>, vector<8x1xf32>
      %cst_69 = arith.constant 0.001953125 : f32
      %143 = vector.broadcast %cst_69 : f32 to vector<8x1xf32>
      %144 = arith.mulf %142, %143 : vector<8x1xf32>
      %145 = arith.mulf %141, %141 : vector<8x1xf32>
      %146 = arith.subf %144, %145 : vector<8x1xf32>
      %cst_70 = arith.constant 0.000000e+00 : f32
      %147 = vector.broadcast %cst_70 : f32 to vector<8x1xf32>
      %148 = arith.maximumf %146, %147 : vector<8x1xf32>
      %c0_71 = arith.constant 0 : index
      %c0_72 = arith.constant 0 : index
      %149 = vector.load %arg4[%c0_71, %c0_72] : memref<8x1xf32, #tpu.memory_space<vmem>>, vector<8x1xf32>
      %cst_73 = arith.constant 9.99999974E-6 : f32
      %150 = vector.broadcast %cst_73 : f32 to vector<8x1xf32>
      %151 = arith.addf %148, %150 : vector<8x1xf32>
      %152 = math.rsqrt %151 : vector<8x1xf32>
      %153 = arith.mulf %149, %152 : vector<8x1xf32>
      %c0_74 = arith.constant 0 : index
      %c0_75 = arith.constant 0 : index
      %154 = vector.load %arg5[%c0_74, %c0_75] : memref<8x1xf32, #tpu.memory_space<vmem>>, vector<8x1xf32>
      %155 = arith.mulf %141, %153 : vector<8x1xf32>
      %156 = arith.subf %154, %155 : vector<8x1xf32>
      %c0_76 = arith.constant 0 : index
      %c0_77 = arith.constant 0 : index
      %c0_78 = arith.constant 0 : index
      %157 = vector.load %arg6[%c0_76, %c0_77, %c0_78] : memref<2x8x256xf32, #tpu.memory_space<vmem>>, vector<2x8x256xf32>
      %158 = vector.shape_cast %153 : vector<8x1xf32> to vector<1x8x1xf32>
      %159 = vector.broadcast %158 : vector<1x8x1xf32> to vector<2x8x256xf32>
      %160 = arith.mulf %157, %159 : vector<2x8x256xf32>
      %161 = vector.shape_cast %156 : vector<8x1xf32> to vector<1x8x1xf32>
      %162 = vector.broadcast %161 : vector<1x8x1xf32> to vector<2x8x256xf32>
      %163 = arith.addf %160, %162 : vector<2x8x256xf32>
      %164 = arith.negf %163 : vector<2x8x256xf32>
      %165 = math.exp %164 : vector<2x8x256xf32>
      %cst_79 = arith.constant 1.000000e+00 : f32
      %166 = vector.broadcast %cst_79 : f32 to vector<2x8x256xf32>
      %167 = arith.addf %166, %165 : vector<2x8x256xf32>
      %168 = arith.divf %166, %167 : vector<2x8x256xf32>
      %169 = arith.mulf %163, %168 : vector<2x8x256xf32>
      %c0_80 = arith.constant 0 : index
      %c0_81 = arith.constant 0 : index
      %c0_82 = arith.constant 0 : index
      %170 = vector.load %arg6[%c0_80, %c0_81, %c0_82] : memref<2x8x256xf32, #tpu.memory_space<vmem>>, vector<2x8x256xf32>
      tpu.vector_store %arg6[%c0_80, %c0_81, %c0_82], %169 {strides = array<i32>} : memref<2x8x256xf32, #tpu.memory_space<vmem>>, vector<2x8x256xf32>,
    } else {
    }
    return
  }
  func.func @transform_0(%arg0: i32) -> (i32, i32, i32) {
    %c0_i32 = arith.constant 0 : i32
    %c0_i32_0 = arith.constant 0 : i32
    %c0_i32_1 = arith.constant 0 : i32
    return %arg0, %c0_i32, %c0_i32_0 : i32, i32, i32
  }
  func.func @transform_1(%arg0: i32) -> (i32, i32, i32) {
    %c0_i32 = arith.constant 0 : i32
    %c0_i32_0 = arith.constant 0 : i32
    %c0_i32_1 = arith.constant 0 : i32
    %c0_i32_2 = arith.constant 0 : i32
    return %c0_i32, %c0_i32_0, %c0_i32_1 : i32, i32, i32
  }
  func.func @transform_2(%arg0: i32) -> (i32, i32) {
    %c0_i32 = arith.constant 0 : i32
    %c0_i32_0 = arith.constant 0 : i32
    %c0_i32_1 = arith.constant 0 : i32
    return %c0_i32, %c0_i32_0 : i32, i32
  }
  func.func @transform_3(%arg0: i32) -> (i32, i32) {
    %c0_i32 = arith.constant 0 : i32
    %c0_i32_0 = arith.constant 0 : i32
    %c0_i32_1 = arith.constant 0 : i32
    return %c0_i32, %c0_i32_0 : i32, i32
  }
  func.func @transform_4(%arg0: i32) -> (i32, i32) {
    %c0_i32 = arith.constant 0 : i32
    %c0_i32_0 = arith.constant 0 : i32
    %c0_i32_1 = arith.constant 0 : i32
    return %c0_i32, %c0_i32_0 : i32, i32
  }
  func.func @transform_5(%arg0: i32) -> (i32, i32, i32) {
    %c0_i32 = arith.constant 0 : i32
    %c0_i32_0 = arith.constant 0 : i32
    %c0_i32_1 = arith.constant 0 : i32
    %c0_i32_2 = arith.constant 0 : i32
    return %c0_i32, %c0_i32_0, %c0_i32_1 : i32, i32, i32
  }
}

</mosaic_0001>

<bundles_post_ra>
// kernel: tpu_custom_call.1
= control target key start
LH: loop header
LB: loop body
LE: loop exit
PB: predicated region body
PF: predicated region fallthrough
CT: control target
= control target key end

     0   :  { %10 = vsyncpa [#allocation5], 0  ;;  %s1161_s0 = inlined_call_operand.hbm [shape: f32[2,4,288], index: 0, kind: input, shape index: {}]   ;;  %s1162_s1 = inlined_call_operand.vmem [shape: f32[1,8,36], index: 1, kind: input, shape index: {}]   ;;  %s1163_s2 = inlined_call_operand.vmem [shape: s32[1,288], index: 2, kind: input, shape index: {}]   ;;  %s1164_s3 = inlined_call_operand.vmem [shape: f32[8,1], index: 3, kind: input, shape index: {}]   ;;  %s1165_s4 = inlined_call_operand.vmem [shape: f32[8,1], index: 4, kind: input, shape index: {}]   ;;  %s1166_s5 = inlined_call_operand.hbm [shape: f32[2,8,256], index: 5, kind: output, shape index: {}]  }
   0x1   :  { %11 = vsyncpa [#allocation6], 0  ;;  %s856_s18 = smov [#allocation4]   ;;  %s808_s22 = scalar_lea.hbm %s1161_s0, 384 }
   0x2   :  { %s17_s19 = sshll.u32 %s856_s18, 4  ;;  %p809_p0 = scmp.ne.s32.totalorder %s1161_s0, %s808_s22  ;;  %s18_s19 = int_to_ptr.vmem [resolvable:$true] %s17_s19 }
   0x3   :  { %p812_p1 = scmp.lt.u32.totalorder %s808_s22, %s1161_s0 }
   0x5   :  { %p814_p2 = pnand %p812_p1, %p809_p0 }
   0x7   :  { %817 = shalt.err (!%p814_p2)
}
   0x8   :  { %s818_s27 = scalar_lea.vmem %s18_s19, 384  ;;  %p823_p4 = scmp.lt.s32.totalorder %s18_s19, %s18_s19 }
   0x9   :  { %p819_p3 = scmp.ne.s32.totalorder %s18_s19, %s818_s27  ;;  %p824_p5 = scmp.lt.s32.totalorder %s818_s27, %s818_s27 }
   0xb   :  { %p825_p6 = por %p824_p5, %p823_p4 }
   0xd   :  { %p826_p7 = pnand %p825_p6, %p819_p3 }
   0xf   :  { %829 = shalt.err (!%p826_p7)
}
  0x10   :  { %s857_s28 = smov 192   ;;  %s858_s29 = smov 12  }
  0x11   :  { %23 = dma.hbm_to_vmem [thread:$0]  %s1161_s0, 384, %s18_s19, [#allocation5], %s857_s28, %s857_s28, %s858_s29  }
  0x12   :  { %852 = dma.done.wait [#allocation5], 384  }
  0x13   :  { %853 = vsyncadd [#allocation5], 4294966912  ;;  %v914_v0 = vld [vmem:[#allocation4] sm:$0xff]  ;;  %s859_s7 = smov 32   ;;  %v917_v1 = vld [vmem:[#allocation4 + $0xc] sm:$0xff]  ;;  %s860_s8 = smov 96   ;;  %v66_v45 = vlaneseq }
  0x14   :  { %56 = vrot.lane.b32.xlu0 %v914_v0, %s859_s7  ;;  %v190_v2 = vrot.slane %v914_v0, 4  ;;  %v53_v3 = vcombine.high %v914_v0, %v914_v0  ;;  %s861_s0 = smov 95   ;;  %v862_v4 = vmov 0   ;;  %v51_v5 = vld [vmem:[#allocation4 + $0x8] sm:$0xf]  ;;  %vm55_vm0 = vcmask 1047808  }
  0x15   :  { %785 = vset.pattern.permute.xlu0 %v862_v4  ;;  %786 = vset.pattern.permute.xlu1 %v862_v4  ;;  %v318_v8 = vld [vmem:[#allocation4 + $0x14] sm:$0xf]  ;;  %v320_v10 = vcombine.high %v917_v1, %v917_v1  ;;  %s863_s9 = smov 113   ;;  %s864_s10 = smov 97   ;;  %v428_v17 = vrot.slane %v917_v1, 4  ;;  %vm39_vm1 = vcmask 7168  }
  0x16   :  { %s865_s11 = smov 111   ;;  %s866_s12 = smov 127   ;;  %v868_v32 = vmov 0.0   ;;  %v42_v46 = vld [vmem:[%s1163_s2] sm:$0x7]  ;;  %v67_v47 = vshrl.u32 %v66_v45, 7 }
  0x17   :  { %v690_v15 = vpack.i.bf16 %v320_v10, %v914_v0  ;;  %s867_s13 = smov 112   ;;  %v765_v31 = vpack.i.bf16 %v917_v1, %v320_v10  ;;  %288 = vmatprep.mubr.f32.mxu0 %v868_v32  ;;  %523 = vmatprep.mubr.f32.mxu1 %v868_v32  ;;  %40 = vst.msk [vmem:[#allocation2] sm:$0xff] %vm39_vm1, %v868_v32  ;;  %41 = vst.msk [vmem:[#allocation3] sm:$0xff] %vm39_vm1, %v868_v32  ;;  %vm43_vm2 = vcmp.ge.s32.totalorder %v42_v46, 1  ;;  %vm122_vm8 = vcmask 924672  }
  0x18   :  { %322 = vrot.lane.b32.xlu0 %v917_v1, %s859_s7  ;;  %vm44_vm3 = vcmp.lt.s32.totalorder %v42_v46, 17  ;;  %vm46_vm4 = vcmp.ge.s32.totalorder %v42_v46, 4294967295  ;;  %vm47_vm5 = vcmp.lt.s32.totalorder %v42_v46, 15  ;;  %v72_v50 = vsub.s32 1, %v67_v47 }
  0x19   :  { %vm45_vm6 = vmand %vm43_vm2, %vm44_vm3  ;;  %v68_v55 = vsub.s32 0, %v67_v47  ;;  %vm135_vm9 = vcmask 908288   ;;  %vm85_vm11 = vcmask 793600   ;;  %vm109_vm13 = vcmask 1039360  }
  0x1a   :  { %vm48_vm7 = vmand %vm46_vm4, %vm47_vm5  ;;  %v65_v51 = vsel %vm45_vm6, 1, %v862_v4  ;;  %vm204_vm2 = vcmask 1043456   ;;  %vm199_vm3 = vcmask 785408   ;;  %vm158_vm4 = vcmask 777216  }
  0x1b   :  { %v92_v54 = vsel %vm48_vm7, 1, %v862_v4  ;;  %v980_v56 = vrot.slane %v65_v51, %v72_v50  ;;  %v987_v63 = vrot.slane %v65_v51, %v68_v55  ;;  %vm214_vm5 = vcmask 293888  }
  0x1c   :  { %193 = vrot.lane.b32.xlu0 %v190_v2, %s860_s8  ;;  %v982_v61 = vrot.slane %v92_v54, %v72_v50  ;;  %v984_v62 = vrot.slane %v92_v54, %v68_v55 }
  0x1d   :  { %vm75_vm10 = vcmp.eq.s32.totalorder %v980_v56, 1  ;;  %vm74_vm15 = vcmp.eq.s32.totalorder %v987_v63, 1 }
  0x1e   :  { %vm102_vm12 = vcmp.eq.s32.totalorder %v982_v61, 1  ;;  %vm101_vm14 = vcmp.eq.s32.totalorder %v984_v62, 1 }
  0x20   :  { %154 = vrot.lane.b32.xlu0 %v53_v3, %s861_s0 }
  0x86   :  { %v57_v6 = vpop.permute.xlu0 %56 }
  0x87   :  { %v58_v7 = vsel %vm55_vm0, %v57_v6, %v51_v5 }
  0x88   :  { %v710_v9 = vpack.i.bf16 %v58_v7, %v53_v3  ;;  %v720_v13 = vpack.i.bf16 %v53_v3, %v58_v7  ;;  %v192_v23 = vrot.slane %v58_v7, 4 }
  0x8a   :  { %v323_v11 = vpop.permute.xlu0 %322  ;;  %711 = vrot.lane.b32.xlu0 %v710_v9, %s863_s9  ;;  %681 = vrot.lane.b32.xlu1 %v710_v9, %s859_s7  ;;  %v750_v26 = vpack.i.bf16 %v192_v23, %v53_v3 }
  0x8b   :  { %v324_v12 = vsel %vm55_vm0, %v323_v11, %v318_v8 }
  0x8c   :  { %v685_v14 = vpack.i.bf16 %v324_v12, %v320_v10  ;;  %v735_v16 = vpack.i.bf16 %v917_v1, %v324_v12  ;;  %v430_v35 = vrot.slane %v324_v12, 4 }
  0x8e   :  { %721 = vrot.lane.b32.xlu0 %v720_v13, %s864_s10  ;;  %686 = vrot.lane.b32.xlu1 %v685_v14, %s859_s7  ;;  %v780_v36 = vpack.i.bf16 %v430_v35, %v320_v10  ;;  %v963_v40 = vpop.permute.xlu0 %193 }
  0x92   :  { %726 = vrot.lane.b32.xlu0 %v710_v9, %s865_s11  ;;  %691 = vrot.lane.b32.xlu1 %v690_v15, %s863_s9  ;;  %v967_v42 = vpop.permute.xlu0 %154 }
  0x96   :  { %696 = vrot.lane.b32.xlu1 %v690_v15, %s866_s12 }
  0x9a   :  { %701 = vrot.lane.b32.xlu1 %v690_v15, %s865_s11 }
  0x9e   :  { %706 = vrot.lane.b32.xlu1 %v690_v15, %s867_s13 }
  0xa2   :  { %716 = vrot.lane.b32.xlu1 %v710_v9, %s866_s12 }
  0xa6   :  { %731 = vrot.lane.b32.xlu1 %v710_v9, %s867_s13 }
  0xaa   :  { %736 = vrot.lane.b32.xlu1 %v735_v16, %s863_s9 }
  0xae   :  { %741 = vrot.lane.b32.xlu1 %v735_v16, %s866_s12 }
  0xb2   :  { %156 = vrot.lane.b32.xlu1 %v58_v7, %s861_s0 }
  0xb6   :  { %761 = vrot.lane.b32.xlu1 %v735_v16, %s865_s11 }
  0xba   :  { %771 = vrot.lane.b32.xlu1 %v735_v16, %s867_s13 }
  0xbe   :  { %431 = vrot.lane.b32.xlu1 %v428_v17, %s860_s8 }
  0xc2   :  { %396 = vrot.lane.b32.xlu1 %v324_v12, %s861_s0 }
  0xfc   :  { %v682_v18 = vpop.permute.xlu1 %681  ;;  %v712_v44 = vpop.permute.xlu0 %711 }
  0xfd   :  { %v684_v24 = vunpack.i.h.bf16 %v682_v18  ;;  %v683_v25 = vunpack.i.l.bf16 %v682_v18  ;;  %v714_v57 = vunpack.i.h.bf16 %v712_v44  ;;  %v713_v58 = vunpack.i.l.bf16 %v712_v44 }
  0xff   :  { %v63_v27 = vsel %vm55_vm0, %v683_v25, %v57_v6  ;;  %v64_v28 = vsel %vm55_vm0, %v684_v24, %v683_v25  ;;  %v124_v2 = vsel %vm122_vm8, %v713_v58, %v714_v57 }
 0x100   :  { %v687_v19 = vpop.permute.xlu1 %686  ;;  %v755_v29 = vpack.i.bf16 %v64_v28, %v63_v27  ;;  %v974_v49 = vpop.permute.xlu0 %721  ;;  %v128_v13 = vsel %vm75_vm10, %v124_v2, 0.0  ;;  %v165_v27 = vcombine.low %v914_v0, %v914_v0 }
 0x101   :  { %v688_v20 = vunpack.i.l.bf16 %v687_v19  ;;  %v689_v30 = vunpack.i.h.bf16 %v687_v19  ;;  %v724_v3 = vunpack.i.h.bf16 %v974_v49  ;;  %v723_v4 = vunpack.i.l.bf16 %v974_v49 }
 0x103   :  { %v329_v21 = vsel %vm55_vm0, %v688_v20, %v323_v11  ;;  %v330_v33 = vsel %vm55_vm0, %v689_v30, %v688_v20  ;;  %v147_v14 = vsel %vm85_vm11, %v724_v3, %v723_v4  ;;  %vm179_vm0 = vcmask 916480  }
 0x104   :  { %v745_v22 = vpack.i.bf16 %v329_v21, %v914_v0  ;;  %v775_v34 = vpack.i.bf16 %v324_v12, %v330_v33  ;;  %v957_v37 = vpop.permute.xlu1 %691  ;;  %v727_v53 = vpop.permute.xlu0 %726  ;;  %v151_v28 = vsel %vm75_vm10, %v147_v14, 0.0 }
 0x105   :  { %v729_v59 = vunpack.i.h.bf16 %v727_v53  ;;  %v728_v60 = vunpack.i.l.bf16 %v727_v53  ;;  %v693_v5 = vunpack.i.l.bf16 %v957_v37  ;;  %v694_v24 = vunpack.i.h.bf16 %v957_v37 }
 0x106   :  { %746 = vrot.lane.b32.xlu0 %v745_v22, %s864_s10  ;;  %v170_v22 = vrot.slane %v128_v13, 4 }
 0x107   :  { %v123_v15 = vsel %vm122_vm8, %v693_v5, %v713_v58 }
 0x108   :  { %v959_v38 = vpop.permute.xlu1 %696 }
 0x109   :  { %v698_v11 = vunpack.i.l.bf16 %v959_v38  ;;  %v699_v37 = vunpack.i.h.bf16 %v959_v38 }
 0x10a   :  { %751 = vrot.lane.b32.xlu0 %v750_v26, %s860_s8  ;;  %v127_v26 = vsel %vm74_vm15, %v123_v15, 0.0 }
 0x10b   :  { %v169_v45 = vrot.slane %v127_v26, 4  ;;  %v404_v26 = vcombine.low %v917_v1, %v917_v1 }
 0x10c   :  { %v961_v39 = vpop.permute.xlu1 %701 }
 0x10d   :  { %v703_v7 = vunpack.i.l.bf16 %v961_v39  ;;  %v704_v46 = vunpack.i.h.bf16 %v961_v39 }
 0x10e   :  { %756 = vrot.lane.b32.xlu0 %v755_v29, %s864_s10 }
 0x10f   :  { %v136_v17 = vsel %vm135_vm9, %v703_v7, %v728_v60 }
 0x110   :  { %v965_v41 = vpop.permute.xlu1 %706  ;;  %v140_v30 = vsel %vm101_vm14, %v136_v17, 0.0 }
 0x111   :  { %v186_v47 = vrot.slane %v140_v30, 4 }
 0x112   :  { %152 = vrot.lane.b32.xlu0 %v914_v0, %s861_s0 }
 0x114   :  { %v717_v43 = vpop.permute.xlu1 %716 }
 0x115   :  { %v719_v8 = vunpack.i.h.bf16 %v717_v43  ;;  %v718_v9 = vunpack.i.l.bf16 %v717_v43 }
 0x116   :  { %766 = vrot.lane.b32.xlu0 %v765_v31, %s864_s10  ;;  %v708_v31 = vunpack.i.l.bf16 %v965_v41 }
 0x117   :  { %v111_v18 = vsel %vm109_vm13, %v718_v9, %v719_v8  ;;  %v110_v23 = vsel %vm109_vm13, %v698_v11, %v718_v9 }
 0x118   :  { %v972_v48 = vpop.permute.xlu1 %731  ;;  %v115_v32 = vsel %vm102_vm12, %v111_v18, 0.0 }
 0x119   :  { %v734_v19 = vunpack.i.h.bf16 %v972_v48  ;;  %v733_v20 = vunpack.i.l.bf16 %v972_v48  ;;  %v208_v51 = vsel %vm204_vm2, %v115_v32, %v170_v22 }
 0x11a   :  { %776 = vrot.lane.b32.xlu0 %v775_v34, %s864_s10 }
 0x11b   :  { %v181_v43 = vsel %vm179_vm0, %v733_v20, %v734_v19  ;;  %v180_v53 = vsel %vm179_vm0, %v708_v31, %v733_v20 }
 0x11c   :  { %v977_v52 = vpop.permute.xlu1 %736 }
 0x11d   :  { %v739_v33 = vunpack.i.h.bf16 %v977_v52  ;;  %v738_v44 = vunpack.i.l.bf16 %v977_v52 }
 0x11e   :  { %781 = vrot.lane.b32.xlu0 %v780_v36, %s860_s8  ;;  %v114_v36 = vsel %vm101_vm14, %v110_v23, 0.0 }
 0x11f   :  { %v207_v38 = vsel %vm204_vm2, %v114_v36, %v169_v45  ;;  %v364_v58 = vsel %vm122_vm8, %v739_v33, %v694_v24 }
 0x120   :  { %v993_v6 = vpop.permute.xlu1 %741 }
 0x121   :  { %v743_v52 = vunpack.i.l.bf16 %v993_v6  ;;  %v744_v2 = vunpack.i.h.bf16 %v993_v6 }
 0x122   :  { %394 = vrot.lane.b32.xlu0 %v320_v10, %s861_s0  ;;  %v137_v10 = vsel %vm135_vm9, %v728_v60, %v729_v59  ;;  %v365_v60 = vsel %vm122_vm8, %v694_v24, %v738_v44 }
 0x123   :  { %v141_v16 = vsel %vm102_vm12, %v137_v10, 0.0  ;;  %v369_v17 = vsel %vm75_vm10, %v365_v60, 0.0 }
 0x124   :  { %v1017_v21 = vpop.permute.xlu1 %156  ;;  %v187_v29 = vrot.slane %v141_v16, 4  ;;  %v409_v31 = vrot.slane %v369_v17, 4 }
 0x125   :  { %v160_v30 = vsel %vm158_vm4, %v967_v42, %v1017_v21 }
 0x126   :  { %392 = vrot.lane.b32.xlu0 %v917_v1, %s861_s0  ;;  %v210_v39 = vsel %vm204_vm2, %v181_v43, %v187_v29 }
 0x128   :  { %v762_v54 = vpop.permute.xlu1 %761 }
 0x129   :  { %v763_v8 = vunpack.i.l.bf16 %v762_v54  ;;  %v764_v18 = vunpack.i.h.bf16 %v762_v54 }
 0x12b   :  { %v377_v20 = vsel %vm135_vm9, %v704_v46, %v763_v8 }
 0x12c   :  { %v772_v22 = vpop.permute.xlu1 %771 }
 0x12d   :  { %v774_v54 = vunpack.i.h.bf16 %v772_v22 }
 0x178   :  { %v1000_v12 = vpop.permute.xlu0 %746 }
 0x179   :  { %v748_v48 = vunpack.i.l.bf16 %v1000_v12 }
 0x17b   :  { %v146_v9 = vsel %vm85_vm11, %v748_v48, %v724_v3  ;;  %v353_v3 = vsel %vm109_vm13, %v699_v37, %v743_v52  ;;  %v749_v48 = vunpack.i.h.bf16 %v1000_v12  ;;  %v213_v12 = vld [vmem:[%s1162_s1] sm:$0xff] }
 0x17c   :  { %v752_v25 = vpop.permute.xlu0 %751  ;;  %v150_v19 = vsel %vm74_vm15, %v146_v9, 0.0  ;;  %v357_v29 = vsel %vm102_vm12, %v353_v3, 0.0 }
 0x17d   :  { %v754_v34 = vunpack.i.h.bf16 %v752_v25  ;;  %v753_v35 = vunpack.i.l.bf16 %v752_v25  ;;  %v444_v21 = vsel %vm204_vm2, %v357_v29, %v409_v31 }
 0x17f   :  { %v201_v59 = vsel %vm199_vm3, %v753_v35, %v754_v34  ;;  %v200_v6 = vsel %vm199_vm3, %v963_v40, %v753_v35  ;;  %v352_v40 = vsel %vm109_vm13, %v744_v2, %v699_v37  ;;  %v376_v34 = vsel %vm135_vm9, %v764_v18, %v704_v46 }
 0x180   :  { %v757_v50 = vpop.permute.xlu0 %756  ;;  %v212_v15 = vsel %vm204_vm2, %v151_v28, %v201_v59  ;;  %v211_v25 = vsel %vm204_vm2, %v150_v19, %v200_v6  ;;  %v209_v28 = vsel %vm204_vm2, %v180_v53, %v186_v47  ;;  %v356_v32 = vsel %vm101_vm14, %v352_v40, 0.0 }
 0x181   :  { %v759_v55 = vunpack.i.h.bf16 %v757_v50  ;;  %v758_v57 = vunpack.i.l.bf16 %v757_v50  ;;  %v652_v24 = vpack.c.bf16 %v212_v15, %v210_v39  ;;  %v773_v35 = vunpack.i.l.bf16 %v772_v22 }
 0x182   :  { %v654_v36 = vpack.c.bf16 %v211_v25, %v209_v28  ;;  %v164_v47 = vsel %vm102_vm12, %v160_v30, 0.0 }
 0x183   :  { %v87_v5 = vsel %vm85_vm11, %v758_v57, %v759_v55  ;;  %v86_v7 = vsel %vm85_vm11, %v723_v4, %v758_v57  ;;  %v432_v57 = vpop.permute.xlu1 %431 }
 0x184   :  { %v153_v10 = vpop.permute.xlu0 %152  ;;  %v91_v11 = vsel %vm75_vm10, %v87_v5, 0.0  ;;  %v90_v13 = vsel %vm74_vm15, %v86_v7, 0.0 }
 0x185   :  { %v206_v14 = vsel %vm204_vm2, %v91_v11, %v914_v0  ;;  %v205_v4 = vsel %vm204_vm2, %v90_v13, %v165_v27  ;;  %v368_v0 = vsel %vm74_vm15, %v364_v58, 0.0  ;;  %v709_v27 = vunpack.i.h.bf16 %v965_v41 }
 0x186   :  { %v648_v49 = vpack.c.bf16 %v208_v51, %v206_v14  ;;  %v650_v16 = vpack.c.bf16 %v207_v38, %v205_v4  ;;  %v408_v33 = vrot.slane %v368_v0, 4  ;;  %v381_v41 = vsel %vm102_vm12, %v377_v20, 0.0 }
 0x187   :  { %v159_v37 = vsel %vm158_vm4, %v153_v10, %v967_v42  ;;  %v380_v51 = vsel %vm101_vm14, %v376_v34, 0.0  ;;  %v425_v53 = vrot.slane %v381_v41, 4  ;;  %v419_v55 = vsel %vm179_vm0, %v709_v27, %v773_v35  ;;  %v397_v19 = vpop.permute.xlu1 %396  ;;  %v300_v41 = vld [vmem:[#allocation2] sm:$0xff] }
 0x188   :  { %v767_v23 = vpop.permute.xlu0 %766  ;;  %649 = vmatprep.subr.bf16.mxu0 %v648_v49  ;;  %v443_v42 = vsel %vm204_vm2, %v356_v32, %v408_v33  ;;  %v163_v38 = vsel %vm101_vm14, %v159_v37, 0.0  ;;  %v424_v11 = vrot.slane %v380_v51, 4  ;;  %v418_v13 = vsel %vm179_vm0, %v774_v54, %v709_v27 }
 0x189   :  { %651 = vmatpush1.bf16.msra.mxu0 %v650_v16  ;;  %v769_v43 = vunpack.i.h.bf16 %v767_v23  ;;  %v768_v44 = vunpack.i.l.bf16 %v767_v23  ;;  %v446_v3 = vsel %vm204_vm2, %v419_v55, %v425_v53 }
 0x18a   :  { %653 = vmatprep.subr.bf16.mxu0 %v652_v24  ;;  %v445_v20 = vsel %vm204_vm2, %v418_v13, %v424_v11 }
 0x18b   :  { %v386_v59 = vsel %vm85_vm11, %v769_v43, %v768_v44 }
 0x18c   :  { %v777_v45 = vpop.permute.xlu0 %776  ;;  %v390_v16 = vsel %vm74_vm15, %v386_v59, 0.0 }
 0x18d   :  { %v779_v50 = vunpack.i.h.bf16 %v777_v45  ;;  %v778_v46 = vunpack.i.l.bf16 %v777_v45  ;;  %655 = vmatpush1.bf16.msra.mxu0 %v654_v36  ;;  %v307_v36 = vld [vmem:[#allocation3] sm:$0xff] }
 0x18e   :  { %638 = vmatprep.subr.msk.mxu0 %vm204_vm2, %v164_v47 }
 0x18f   :  { %v341_v58 = vsel %vm85_vm11, %v749_v48, %v778_v46  ;;  %v340_v52 = vsel %vm85_vm11, %v779_v50, %v749_v48  ;;  %v387_v39 = vsel %vm85_vm11, %v768_v44, %v779_v50 }
 0x190   :  { %v782_v60 = vpop.permute.xlu0 %781  ;;  %v345_v2 = vsel %vm75_vm10, %v341_v58, 0.0  ;;  %v344_v5 = vsel %vm74_vm15, %v340_v52, 0.0  ;;  %v391_v49 = vsel %vm75_vm10, %v387_v39, 0.0  ;;  %v559_v58 = vld [vmem:[%s1164_s3] sm:$0xff]  ;;  %s869_s3 = smov [#allocation7]  }
 0x191   :  { %v784_v7 = vunpack.i.h.bf16 %v782_v60  ;;  %v783_v8 = vunpack.i.l.bf16 %v782_v60  ;;  %639 = vmatpush1.msk.msra.mxu0 %vm204_vm2, %v163_v38  ;;  %v442_v9 = vsel %vm204_vm2, %v345_v2, %v917_v1  ;;  %v441_v10 = vsel %vm204_vm2, %v344_v5, %v404_v26  ;;  %v563_v39 = vld [vmem:[%s1165_s4] sm:$0xff]  ;;  %s625_s4 = sshll.u32 %s869_s3, 4  ;;  %s626_s4 = int_to_ptr.vmem [resolvable:$true] %s625_s4 }
 0x192   :  { %640 = vmatmul.mubr.msk.f32.vlgmr.msra.gmra.mrb[0].mxu0 %vm214_vm5, %v213_v12  ;;  %v656_v6 = vpack.c.bf16 %v444_v21, %v442_v9  ;;  %v658_v14 = vpack.c.bf16 %v443_v42, %v441_v10  ;;  %s830_s20 = scalar_lea.vmem %s626_s4, 512  ;;  %p835_p9 = scmp.lt.s32.totalorder %s626_s4, %s626_s4 }
 0x193   :  { %v437_v4 = vsel %vm199_vm3, %v432_v57, %v783_v8  ;;  %v438_v15 = vsel %vm199_vm3, %v783_v8, %v784_v7  ;;  %p831_p8 = scmp.ne.s32.totalorder %s626_s4, %s830_s20  ;;  %p836_p10 = scmp.lt.s32.totalorder %s830_s20, %s830_s20 }
 0x194   :  { %v395_v1 = vpop.permute.xlu0 %394  ;;  %657 = vmatprep.subr.bf16.mxu1 %v656_v6  ;;  %v448_v17 = vsel %vm204_vm2, %v391_v49, %v438_v15  ;;  %v447_v18 = vsel %vm204_vm2, %v390_v16, %v437_v4 }
 0x195   :  { %659 = vmatpush1.bf16.msra.mxu1 %v658_v14  ;;  %v660_v40 = vpack.c.bf16 %v448_v17, %v446_v3  ;;  %v399_v0 = vsel %vm158_vm4, %v395_v1, %v397_v19  ;;  %v662_v56 = vpack.c.bf16 %v447_v18, %v445_v20  ;;  %p837_p11 = por %p836_p10, %p835_p9 }
 0x196   :  { %v403_v63 = vsel %vm102_vm12, %v399_v0, 0.0 }
 0x197   :  { %661 = vmatprep.subr.bf16.mxu1 %v660_v40  ;;  %p838_p12 = pnand %p837_p11, %p831_p8 }
 0x198   :  { %v393_v22 = vpop.permute.xlu0 %392 }
 0x199   :  { %v398_v23 = vsel %vm158_vm4, %v393_v22, %v395_v1  ;;  %663 = vmatpush1.bf16.msra.mxu1 %v662_v56 }
 0x19a   :  { %641 = vmatprep.subr.msk.mxu1 %vm204_vm2, %v403_v63  ;;  %v402_v24 = vsel %vm101_vm14, %v398_v23, 0.0 }
 0x19d   :  { %642 = vmatpush1.msk.msra.mxu1 %vm204_vm2, %v402_v24 }
 0x19e   :  { %643 = vmatmul.mubr.msk.f32.vlgmr.msra.gmra.mrb[0].mxu1 %vm214_vm5, %v213_v12 }
 0x265   :  { %v290_v25 = vpop.f32.mrb[0].mxu0 }
 0x266   :  { %v292_v26 = vpop.f32.mrb[1].mxu0  ;;  %v308_v27 = vmul.f32 %v290_v25, %v290_v25 }
 0x267   :  { %v309_v28 = vmul.f32 %v292_v26, %v292_v26  ;;  %v301_v29 = vadd.f32 %v292_v26, %v290_v25 }
 0x269   :  { %302 = vadd.xlane.f32.xlu1 %v301_v29  ;;  %v310_v61 = vadd.f32 %v309_v28, %v308_v27 }
 0x26b   :  { %311 = vadd.xlane.f32.xlu0 %v310_v61 }
 0x271   :  { %v525_v30 = vpop.f32.mrb[0].mxu1 }
 0x272   :  { %v527_v31 = vpop.f32.mrb[1].mxu1  ;;  %v542_v32 = vmul.f32 %v525_v30, %v525_v30 }
 0x273   :  { %v543_v33 = vmul.f32 %v527_v31, %v527_v31  ;;  %v536_v34 = vadd.f32 %v527_v31, %v525_v30 }
 0x275   :  { %537 = vadd.xlane.f32.xlu0 %v536_v34  ;;  %v544_v62 = vadd.f32 %v543_v33, %v542_v32 }
 0x277   :  { %545 = vadd.xlane.f32.xlu1 %v544_v62 }
 0x2f6   :  { %v303_v35 = vpop.xlane.xlu1 %302 }
 0x2f7   :  { %v304_v37 = vadd.f32 %v303_v35, %v300_v41 }
 0x2f8   :  { %v312_v43 = vpop.xlane.xlu0 %311 }
 0x2f9   :  { %306 = vst.msk [vmem:[#allocation2] sm:$0xff] %vm39_vm1, %v304_v37  ;;  %v313_v44 = vadd.f32 %v312_v43, %v307_v36 }
 0x2fb   :  { %314 = vst.msk [vmem:[#allocation3] sm:$0xff] %vm39_vm1, %v313_v44 }
 0x300   :  { %v535_v45 = vld [vmem:[#allocation2] sm:$0xff] }
 0x302   :  { %v538_v21 = vpop.xlane.xlu0 %537  ;;  %v541_v47 = vld [vmem:[#allocation3] sm:$0xff] }
 0x303   :  { %v539_v48 = vadd.f32 %v538_v21, %v535_v45 }
 0x304   :  { %v546_v50 = vpop.xlane.xlu1 %545 }
 0x305   :  { %540 = vst.msk [vmem:[#allocation2] sm:$0xff] %vm39_vm1, %v539_v48  ;;  %v547_v46 = vadd.f32 %v546_v50, %v541_v47 }
 0x307   :  { %548 = vst.msk [vmem:[#allocation3] sm:$0xff] %vm39_vm1, %v547_v46 }
 0x30c   :  { %v552_v51 = vld [vmem:[#allocation2] sm:$0xff] }
 0x30d   :  { %v553_v53 = vmul.f32 0.001953125, %v552_v51 }
 0x30e   :  { %v554_v54 = vld [vmem:[#allocation3] sm:$0xff] }
 0x30f   :  { %v555_v42 = vmul.f32 0.001953125, %v554_v54  ;;  %v556_v55 = vmul.f32 %v553_v53, %v553_v53 }
 0x311   :  { %v557_v57 = vsub.f32 %v555_v42, %v556_v55 }
 0x313   :  { %v558_v38 = vmax.f32 %v557_v57, 0.0 }
 0x315   :  { %v560_v12 = vadd.f32 1e-05, %v558_v38 }
 0x317   :  { %790 = vrsqrt.f32 %v560_v12 }
 0x321   :  { %v791_v52 = vpop.eup %790 }
 0x322   :  { %v562_v59 = vmul.f32 %v791_v52, %v559_v58 }
 0x324   :  { %572 = vperm.xlu0 %785, %v562_v59   ;;  %v564_v60 = vmul.f32 %v562_v59, %v553_v53 }
 0x326   :  { %v565_v2 = vsub.f32 %v563_v39, %v564_v60 }
 0x328   :  { %581 = vperm.xlu1 %786, %v565_v2  }
 0x3a3   :  { %v573_v5 = vpop.permute.xlu0 %572 }
 0x3a4   :  { %v575_v7 = vmul.f32 %v573_v5, %v290_v25  ;;  %v576_v8 = vmul.f32 %v573_v5, %v292_v26  ;;  %v577_v9 = vmul.f32 %v573_v5, %v525_v30  ;;  %v578_v10 = vmul.f32 %v573_v5, %v527_v31 }
 0x3a7   :  { %v582_v11 = vpop.permute.xlu1 %581 }
 0x3a8   :  { %v584_v13 = vadd.f32 %v582_v11, %v575_v7  ;;  %v585_v6 = vadd.f32 %v582_v11, %v576_v8  ;;  %v586_v14 = vadd.f32 %v582_v11, %v577_v9  ;;  %v587_v4 = vadd.f32 %v582_v11, %v578_v10 }
 0x3aa   :  { %v644_v15 = vmul.f32 -1.442695, %v584_v13  ;;  %v645_v49 = vmul.f32 -1.442695, %v585_v6  ;;  %v646_v16 = vmul.f32 -1.442695, %v586_v14 }
 0x3ab   :  { %v647_v1 = vmul.f32 -1.442695, %v587_v4 }
 0x3ac   :  { %792 = vpow2.f32 %v644_v15 }
 0x3ad   :  { %794 = vpow2.f32 %v645_v49 }
 0x3ae   :  { %796 = vpow2.f32 %v646_v16 }
 0x3af   :  { %798 = vpow2.f32 %v647_v1 }
 0x3b6   :  { %v793_v3 = vpop.eup %792 }
 0x3b7   :  { %v795_v17 = vpop.eup %794  ;;  %v600_v18 = vadd.f32 1.0, %v793_v3 }
 0x3b8   :  { %v797_v19 = vpop.eup %796  ;;  %v601_v40 = vadd.f32 1.0, %v795_v17 }
 0x3b9   :  { %v799_v0 = vpop.eup %798  ;;  %v602_v20 = vadd.f32 1.0, %v797_v19  ;;  %800 = vrcp.f32 %v600_v18 }
 0x3ba   :  { %v603_v56 = vadd.f32 1.0, %v799_v0  ;;  %802 = vrcp.f32 %v601_v40 }
 0x3bb   :  { %804 = vrcp.f32 %v602_v20 }
 0x3bc   :  { %806 = vrcp.f32 %v603_v56 }
 0x3c3   :  { %v801_v22 = vpop.eup %800 }
 0x3c4   :  { %v803_v63 = vpop.eup %802  ;;  %v612_v23 = vmul.f32 %v801_v22, %v584_v13 }
 0x3c5   :  { %v805_v24 = vpop.eup %804  ;;  %v613_v25 = vmul.f32 %v803_v63, %v585_v6 }
 0x3c6   :  { %v807_v26 = vpop.eup %806  ;;  %v614_v27 = vmul.f32 %v805_v24, %v586_v14  ;;  %616 = vst [vmem:[#allocation7] sm:$0xff] %v612_v23 }
 0x3c7   :  { %v615_v28 = vmul.f32 %v807_v26, %v587_v4  ;;  %617 = vst [vmem:[#allocation7 + $0x8] sm:$0xff] %v613_v25 }
 0x3c8   :  { %618 = vst [vmem:[#allocation7 + $0x10] sm:$0xff] %v614_v27 }
 0x3c9   :  { %619 = vst [vmem:[#allocation7 + $0x18] sm:$0xff] %v615_v28 }
 0x3ca   :  { %841 = shalt.err (!%p838_p12)
}
 0x3cb   :  { %s842_s23 = scalar_lea.hbm %s1166_s5, 512 }
 0x3cc   :  { %p843_p13 = scmp.ne.s32.totalorder %s1166_s5, %s842_s23  ;;  %p846_p0 = scmp.lt.u32.totalorder %s842_s23, %s1166_s5 }
 0x3ce   :  { %p848_p1 = pnand %p846_p0, %p843_p13 }
 0x3d0   :  { %851 = shalt.err (!%p848_p1)
}
 0x3d1   :  { %s870_s28 = smov 256   ;;  %s871_s29 = smov 16  }
 0x3d2   :  { %631 = dma.vmem_to_hbm [thread:$0]  %s626_s4, 512, %s1166_s5, [#allocation6], %s870_s28, %s870_s28, %s871_s29  }
 0x3d3   :  { %854 = dma.done.wait [#allocation6], 512  }
 0x3d4   :  { %855 = vsyncadd [#allocation6], 4294966784 }
 0x3d5   :  { %635 = vsyncpa [#allocation5], 1 }
 0x3d6   :  { %636 = vsyncpa [#allocation6], 1 }

</bundles_post_ra>
